<compile_context>
chip_gen: v5e
topology: v5e:2x2
jax: 0.10.0
libtpu: 0.0.40
codegen_flags: <defaults>
</compile_context>

<pallas_src>
import functools
import math

import jax
import jax.numpy as jnp
from jax.experimental import pallas as pl
from jax.experimental.pallas import tpu as pltpu


def _round_up(x, m):
    return ((x + m - 1) // m) * m


def _device_vmem_budget():
    """~3/4 of per-core VMEM: <=48 MiB on v7x, <=96 MiB on v5e/v6e."""
    vmem_bytes = 64 << 20              # conservative fallback = v7x per-TC VMEM
    try:
        info = pltpu.get_tpu_info()
        cap = getattr(info, "vmem_capacity_bytes", None)
        if cap:
            vmem_bytes = int(cap)
    except Exception:
        pass
    return (3 * vmem_bytes) // 4


def _tile_divisors(np_, cap):
    """Multiples of 128 that divide np_ (np_ % 128 == 0) and are <= cap."""
    units = np_ // 128
    divs = [128 * d for d in range(1, units + 1) if units % d == 0]
    sel = [t for t in divs if t <= cap]
    return sel if sel else [128]


def _choose_row_tile(np_, cap):
    """Prefer >=2 row tiles (even count when cheap) so v7x's 2 TCs stay busy."""
    cand = _tile_divisors(np_, cap)
    multi = [t for t in cand if np_ // t >= 2]
    if not multi:
        return max(cand)                       # tiny graph: single row tile
    best = max(multi)
    n_tiles = np_ // best
    if n_tiles % 2 and n_tiles < 8:            # small odd count -> one TC idles
        even = [t for t in multi if (np_ // t) % 2 == 0]
        if even:
            best = max(even)
    return best


def _block_spec(shape, index_map, *, buffers=None):
    """BlockSpec, optionally with explicit buffer count (fallback: default)."""
    if buffers is not None:
        try:
            return pl.BlockSpec(shape, index_map,
                                pipeline_mode=pl.Buffered(buffers))
        except (TypeError, ValueError, AttributeError):
            pass
    return pl.BlockSpec(shape, index_map)


# --------------------------- Pass 1: support = X @ W1 -----------------------
def _support_kernel(x_ref, w_ref, out_ref):
    out_ref[...] = jnp.dot(
        x_ref[...], w_ref[...], preferred_element_type=jnp.float32
    ).astype(out_ref.dtype)


# ------------------------ Pass 2: out = adj @ support + b -------------------
def _aggregate_kernel(adj_ref, s_ref, b_ref, out_ref, acc_ref, *, tk, resident):
    k = pl.program_id(1)

    @pl.when(k == 0)
    def _():
        acc_ref[...] = jnp.zeros_like(acc_ref)

    if resident:
        # Whole support matrix lives in VMEM; slice the current k-chunk.
        s_tile = s_ref[pl.ds(pl.multiple_of(k * tk, 128), tk), :]
    else:
        s_tile = s_ref[...]
    acc_ref[...] += jnp.dot(adj_ref[...], s_tile,
                            preferred_element_type=jnp.float32)

    @pl.when(k == pl.num_programs(1) - 1)
    def _():
        # Bias added exactly once per output row tile (finalize branch only).
        out_ref[...] = (acc_ref[...] + b_ref[...]).astype(out_ref.dtype)


def gcn_forward(x, adj, w1, b1, *, compute_dtype=jnp.bfloat16,
                tm_cap=1024, tk_cap=2048):
    """Computes adj @ (x @ w1) + b1 with two Pallas kernels.

    bf16 is the default (pass 2 is HBM-bound; f32 accumulation is preserved
    inside both kernels).  Pass compute_dtype=jnp.float32 for bit-exact math.
    """
    N, F = x.shape
    H = w1.shape[1]
    itemsize = jnp.dtype(compute_dtype).itemsize
    vmem_budget = _device_vmem_budget()

    # Pad feature/hidden dims to lane-dense multiples of 128; pad N only to
    # the next multiple of 128 and pick tiles that divide the padded N.
    Fp = _round_up(F, 128)
    Hp = _round_up(H, 128)
    Np = _round_up(N, 128)

    tm = _choose_row_tile(Np, tm_cap)              # adjacency / output row tile
    tk_opts = _tile_divisors(Np, tk_cap)
    tk = max(tk_opts)                              # reduction (adj column) tile

    # Keep the support matrix resident in VMEM during pass 2 when it
    # comfortably fits; otherwise stream it in (tk, Hp) chunks.
    resident = Np * Hp * itemsize <= vmem_budget // 3

    def _agg_fp(tm_, tk_):
        adj_bytes = 2 * tm_ * tk_ * itemsize                 # double-buffered
        sup_bytes = (Np * Hp * itemsize if resident
                     else 2 * tk_ * Hp * itemsize)
        return (adj_bytes + sup_bytes
                + tm_ * Hp * 4           # f32 accumulator scratch
                + 2 * tm_ * Hp * 4       # f32 output tiles (double-buffered)
                + 2 * Hp * 4)            # bias

    # Shrink tiles until the pass-2 working set fits the device VMEM budget.
    while _agg_fp(tm, tk) > vmem_budget and (tk > 128 or tm > 128):
        if tk >= tm and tk > 128:
            tk = max(t for t in tk_opts if t < tk)
        else:
            tm = max(t for t in _tile_divisors(Np, tm) if t < tm)

    # Pass-1 row tile (shrink independently if F is very wide).
    tm1 = tm

    def _sup_fp(tm_):
        return (2 * tm_ * Fp + Fp * Hp + 2 * tm_ * Hp) * itemsize

    while _sup_fp(tm1) > vmem_budget and tm1 > 128:
        tm1 = max(t for t in _tile_divisors(Np, tm1) if t < tm1)

    # One-time zero padding on the host (zeros keep the math exact).
    x_p = jnp.pad(x.astype(compute_dtype), ((0, Np - N), (0, Fp - F)))
    w_p = jnp.pad(w1.astype(compute_dtype), ((0, Fp - F), (0, Hp - H)))
    adj_p = jnp.pad(adj.astype(compute_dtype), ((0, Np - N), (0, Np - N)))
    b_p = jnp.pad(b1.astype(jnp.float32).reshape(1, H), ((0, 0), (0, Hp - H)))

    # ---- Pass 1: support = X @ W1 (computed once, lane-dense) --------------
    support = pl.pallas_call(
        _support_kernel,
        out_shape=jax.ShapeDtypeStruct((Np, Hp), compute_dtype),
        grid_spec=pltpu.PrefetchScalarGridSpec(
            num_scalar_prefetch=0,
            grid=(Np // tm1,),
            in_specs=[
                pl.BlockSpec((tm1, Fp), lambda i: (i, 0)),
                _block_spec((Fp, Hp), lambda i: (0, 0), buffers=1),  # W1: one DMA
            ],
            out_specs=pl.BlockSpec((tm1, Hp), lambda i: (i, 0)),
        ),
        compiler_params=pltpu.CompilerParams(
            dimension_semantics=("parallel",),
            vmem_limit_bytes=int(min(vmem_budget,
                                     max(16 << 20, 2 * _sup_fp(tm1)))),
        ),
        cost_estimate=pl.CostEstimate(
            flops=2 * Np * Fp * Hp,
            transcendentals=0,
            bytes_accessed=int((Np * Fp + Fp * Hp + Np * Hp) * itemsize),
        ),
    )(x_p, w_p)

    # ---- Pass 2: out = adj @ support + b (tiled, accumulated) --------------
    if resident:
        s_spec = _block_spec((Np, Hp), lambda i, k: (0, 0), buffers=1)
        sup_traffic = Np * Hp * itemsize
    else:
        s_spec = pl.BlockSpec((tk, Hp), lambda i, k: (k, 0))
        sup_traffic = (Np // tm) * Np * Hp * itemsize

    out_p = pl.pallas_call(
        functools.partial(_aggregate_kernel, tk=tk, resident=resident),
        out_shape=jax.ShapeDtypeStruct((Np, Hp), jnp.float32),
        grid_spec=pltpu.PrefetchScalarGridSpec(
            num_scalar_prefetch=0,
            grid=(Np // tm, Np // tk),                   # reduction axis last
            in_specs=[
                pl.BlockSpec((tm, tk), lambda i, k: (i, k)),            # adj
                s_spec,                                                 # support
                _block_spec((1, Hp), lambda i, k: (0, 0), buffers=1),   # bias
            ],
            out_specs=pl.BlockSpec((tm, Hp), lambda i, k: (i, 0)),
            scratch_shapes=[pltpu.VMEM((tm, Hp), jnp.float32)],
        ),
        compiler_params=pltpu.CompilerParams(
            dimension_semantics=("parallel", "arbitrary"),
            vmem_limit_bytes=int(min(vmem_budget,
                                     max(16 << 20, 2 * _agg_fp(tm, tk)))),
        ),
        cost_estimate=pl.CostEstimate(
            flops=2 * Np * Np * Hp,
            transcendentals=0,
            bytes_accessed=int(Np * Np * itemsize + sup_traffic
                               + Np * Hp * 4 + Hp * 4),
        ),
    )(adj_p, support, b_p)

    return out_p[:N, :H]


def init_gc_params(key, in_features, out_features):
    """Mirrors pygcn GraphConvolution.reset_parameters (uniform(-stdv, stdv))."""
    kw, kb = jax.random.split(key)
    stdv = 1.0 / math.sqrt(out_features)
    w = jax.random.uniform(
        kw, (in_features, out_features), jnp.float32, minval=-stdv, maxval=stdv
    )
    b = jax.random.uniform(
        kb, (out_features,), jnp.float32, minval=-stdv, maxval=stdv
    )
    return w, b


if __name__ == "__main__":
    # Small shapes consistent with the module: N nodes, nfeat -> nhid.
    N, nfeat, nhid, nclass = 64, 16, 32, 8
    dropout = 0.5  # unused in forward (matches reference: forward only runs gc1)

    key = jax.random.PRNGKey(0)
    k_x, k_adj, k_gc1, k_gc2 = jax.random.split(key, 4)

    # Inputs: dense node features and a row-normalized dense adjacency.
    x = jax.random.normal(k_x, (N, nfeat), jnp.float32)
    adj_raw = (jax.random.uniform(k_adj, (N, N)) < 0.1).astype(jnp.float32)
    adj_raw = adj_raw + jnp.eye(N, dtype=jnp.float32)          # self loops
    adj = adj_raw / jnp.sum(adj_raw, axis=1, keepdims=True)    # row-normalize

    # Parameters (gc2 is created in __init__ but never used by forward).
    w1, b1 = init_gc_params(k_gc1, nfeat, nhid)
    w2, b2 = init_gc_params(k_gc2, nhid, nclass)  # unused, mirrors __init__

    ref = adj @ (x @ w1) + b1

    # Default bf16 path (HBM-bound pass 2 -> ~2x fewer bytes; f32 accumulation).
    out = jax.block_until_ready(gcn_forward(x, adj, w1, b1))
    assert out.shape == (N, nhid)
    assert jnp.allclose(out, ref, atol=1e-1, rtol=1e-1)

    # Opt-in f32 path (bit-accurate vs the reference).
    out_f32 = jax.block_until_ready(
        gcn_forward(x, adj, w1, b1, compute_dtype=jnp.float32)
    )
    assert out_f32.shape == (N, nhid)
    assert jnp.allclose(out_f32, ref, atol=1e-4, rtol=1e-4)

    print("KERNEL_OK")
</pallas_src>

<mosaic_0001>
module attributes {stable_mosaic.version = 11 : i64} {
  func.func @_support_kernel(%arg0: i32, %arg1: memref<128x128xbf16, #tpu.memory_space<vmem>>, %arg2: memref<128x128xbf16, #tpu.memory_space<vmem>>, %arg3: memref<128x128xbf16, #tpu.memory_space<vmem>>) attributes {dimension_semantics = [#tpu.dimension_semantics<parallel>], iteration_bounds = array<i64: 1>, scalar_prefetch = 0 : i64, scratch_operands = 0 : i64, tpu.core_type = #tpu.core_type<tc>, window_params = [{transform_indices = @transform_0, window_bounds = array<i64: 128, 128>}, {pipeline_mode = #tpu.pipeline_mode<synchronous>, transform_indices = @transform_1, window_bounds = array<i64: 128, 128>}, {transform_indices = @transform_2, window_bounds = array<i64: 128, 128>}]} {
    %c0 = arith.constant 0 : index
    %c0_0 = arith.constant 0 : index
    %0 = vector.load %arg1[%c0, %c0_0] : memref<128x128xbf16, #tpu.memory_space<vmem>>, vector<128x128xbf16>
    %c0_1 = arith.constant 0 : index
    %c0_2 = arith.constant 0 : index
    %1 = vector.load %arg2[%c0_1, %c0_2] : memref<128x128xbf16, #tpu.memory_space<vmem>>, vector<128x128xbf16>
    %cst = arith.constant dense<0.000000e+00> : vector<128x128xf32>
    %2 = tpu.matmul %0, %1, %cst {dimension_numbers = #tpu.dot_dimension_numbers<[1], [0], [0], [1], [0, 0, 1, 1], [], []>} : vector<128x128xbf16>, vector<128x128xbf16>, vector<128x128xf32> -> vector<128x128xf32>
    %3 = arith.truncf %2 : vector<128x128xf32> to vector<128x128xbf16>
    %c0_3 = arith.constant 0 : index
    %c0_4 = arith.constant 0 : index
    %4 = vector.load %arg3[%c0_3, %c0_4] : memref<128x128xbf16, #tpu.memory_space<vmem>>, vector<128x128xbf16>
    tpu.vector_store %arg3[%c0_3, %c0_4], %3 {strides = array<i32>} : memref<128x128xbf16, #tpu.memory_space<vmem>>, vector<128x128xbf16>,
    return
  }
  func.func @transform_0(%arg0: i32) -> (i32, i32) {
    %c0_i32 = arith.constant 0 : i32
    %c0_i32_0 = arith.constant 0 : i32
    return %arg0, %c0_i32 : i32, i32
  }
  func.func @transform_1(%arg0: i32) -> (i32, i32) {
    %c0_i32 = arith.constant 0 : i32
    %c0_i32_0 = arith.constant 0 : i32
    %c0_i32_1 = arith.constant 0 : i32
    return %c0_i32, %c0_i32_0 : i32, i32
  }
  func.func @transform_2(%arg0: i32) -> (i32, i32) {
    %c0_i32 = arith.constant 0 : i32
    %c0_i32_0 = arith.constant 0 : i32
    return %arg0, %c0_i32 : i32, i32
  }
}

</mosaic_0001>

<bundles_post_ra>
// kernel: tpu_custom_call.1
= control target key start
LH: loop header
LB: loop body
LE: loop exit
PB: predicated region body
PF: predicated region fallthrough
CT: control target
= control target key end

     0   :  { %7 = vsyncpa [#allocation3], 0  ;;  %s545_s0 = inlined_call_operand.hbm [shape: bf16[128,128], index: 0, kind: input, shape index: {}]   ;;  %s546_s1 = inlined_call_operand.hbm [shape: bf16[128,128], index: 1, kind: input, shape index: {}]   ;;  %s547_s2 = inlined_call_operand.hbm [shape: bf16[128,128], index: 2, kind: output, shape index: {}]  }
   0x1   :  { %8 = vsyncpa [#allocation6], 0 }
   0x2   :  { %9 = vsyncpa [#allocation4], 0  ;;  %s14_s11 = sshll.u32 %s545_s0, 4  ;;  %s507_s12 = smov [#allocation2]   ;;  %s15_s11 = int_to_ptr.hbm [resolvable:$true] %s14_s11 }
   0x3   :  { %s16_s13 = sshll.u32 %s507_s12, 4  ;;  %s27_s16 = sshll.u32 %s546_s1, 4  ;;  %s17_s13 = int_to_ptr.vmem [resolvable:$true] %s16_s13  ;;  %s28_s16 = int_to_ptr.hbm [resolvable:$true] %s27_s16 }
   0x4   :  { %s508_s17 = smov 64   ;;  %s509_s18 = smov 4  }
   0x5   :  { %22 = dma.hbm_to_vmem [thread:$0]  %s15_s11, 1024, %s17_s13, [#allocation3], %s508_s17, %s508_s17, %s509_s18  }
   0x6   :  { %s510_s19 = smov [#allocation5]  }
   0x7   :  { %s29_s20 = sshll.u32 %s510_s19, 4  ;;  %s30_s20 = int_to_ptr.vmem [resolvable:$true] %s29_s20 }
   0x8   :  { %35 = dma.hbm_to_vmem [thread:$0]  %s28_s16, 1024, %s30_s20, [#allocation6], %s508_s17, %s508_s17, %s509_s18  }
   0x9   :  { %501 = dma.done.wait [#allocation3], 1024  }
   0xa   :  { %502 = vsyncadd [#allocation3], 4294966272 }
   0xb   :  { %503 = dma.done.wait [#allocation6], 1024  }
   0xc   :  { %504 = vsyncadd [#allocation6], 4294966272  ;;  %v352_v0 = vld [vmem:[#allocation5 + $0x38] sm:$0xff]  ;;  %v351_v1 = vld [vmem:[#allocation5 + $0x30] sm:$0xff]  ;;  %s511_s0 = smov [#allocation7]   ;;  %s259_s23 = sshll.u32 %s547_s2, 4  ;;  %s260_s23 = int_to_ptr.hbm [resolvable:$true] %s259_s23 }
   0xd   :  { %172 = vmatpush.bf16.msra.mxu0 %v352_v0  ;;  %400 = vmatpush.bf16.msra.mxu1 %v352_v0  ;;  %v350_v2 = vld [vmem:[#allocation5 + $0x28] sm:$0xff]  ;;  %v349_v3 = vld [vmem:[#allocation5 + $0x20] sm:$0xff]  ;;  %v348_v4 = vld [vmem:[#allocation5 + $0x18] sm:$0xff]  ;;  %s257_s1 = sshll.u32 %s511_s0, 4  ;;  %s258_s1 = int_to_ptr.vmem [resolvable:$true] %s257_s1 }
   0xe   :  { %401 = vmatpush.bf16.msra.mxu2 %v352_v0  ;;  %402 = vmatpush.bf16.msra.mxu3 %v352_v0  ;;  %v347_v5 = vld [vmem:[#allocation5 + $0x10] sm:$0xff]  ;;  %v346_v6 = vld [vmem:[#allocation5 + $0x8] sm:$0xff]  ;;  %v345_v7 = vld [vmem:[#allocation5] sm:$0xff] }
   0xf   :  { %v337_v8 = vld [vmem:[#allocation2] sm:$0xff]  ;;  %v339_v9 = vld [vmem:[#allocation2 + $0x10] sm:$0xff]  ;;  %v338_v12 = vld [vmem:[#allocation2 + $0x8] sm:$0xff] }
  0x10   :  { %v341_v10 = vld [vmem:[#allocation2 + $0x20] sm:$0xff]  ;;  %v343_v11 = vld [vmem:[#allocation2 + $0x30] sm:$0xff]  ;;  %v340_v13 = vld [vmem:[#allocation2 + $0x18] sm:$0xff] }
  0x11   :  { %173 = vmatpush.bf16.msra.mxu0 %v351_v1  ;;  %403 = vmatpush.bf16.msra.mxu1 %v351_v1  ;;  %v342_v14 = vld [vmem:[#allocation2 + $0x28] sm:$0xff]  ;;  %v344_v15 = vld [vmem:[#allocation2 + $0x38] sm:$0xff] }
  0x12   :  { %404 = vmatpush.bf16.msra.mxu2 %v351_v1  ;;  %405 = vmatpush.bf16.msra.mxu3 %v351_v1 }
  0x15   :  { %174 = vmatpush.bf16.msra.mxu0 %v350_v2  ;;  %406 = vmatpush.bf16.msra.mxu1 %v350_v2 }
  0x16   :  { %407 = vmatpush.bf16.msra.mxu2 %v350_v2  ;;  %408 = vmatpush.bf16.msra.mxu3 %v350_v2 }
  0x19   :  { %175 = vmatpush.bf16.msra.mxu0 %v349_v3  ;;  %409 = vmatpush.bf16.msra.mxu1 %v349_v3 }
  0x1a   :  { %410 = vmatpush.bf16.msra.mxu2 %v349_v3  ;;  %411 = vmatpush.bf16.msra.mxu3 %v349_v3 }
  0x1d   :  { %176 = vmatpush.bf16.msra.mxu0 %v348_v4  ;;  %412 = vmatpush.bf16.msra.mxu1 %v348_v4 }
  0x1e   :  { %413 = vmatpush.bf16.msra.mxu2 %v348_v4  ;;  %414 = vmatpush.bf16.msra.mxu3 %v348_v4 }
  0x21   :  { %177 = vmatpush.bf16.msra.mxu0 %v347_v5  ;;  %415 = vmatpush.bf16.msra.mxu1 %v347_v5 }
  0x22   :  { %416 = vmatpush.bf16.msra.mxu2 %v347_v5  ;;  %417 = vmatpush.bf16.msra.mxu3 %v347_v5 }
  0x25   :  { %178 = vmatpush.bf16.msra.mxu0 %v346_v6  ;;  %418 = vmatpush.bf16.msra.mxu1 %v346_v6 }
  0x26   :  { %419 = vmatpush.bf16.msra.mxu2 %v346_v6  ;;  %420 = vmatpush.bf16.msra.mxu3 %v346_v6 }
  0x29   :  { %179 = vmatpush.bf16.msra.mxu0 %v345_v7  ;;  %421 = vmatpush.bf16.msra.mxu1 %v345_v7 }
  0x2a   :  { %422 = vmatpush.bf16.msra.mxu2 %v345_v7  ;;  %423 = vmatpush.bf16.msra.mxu3 %v345_v7 }
  0x2c   :  { %180 = vmatmul.bf16.vlgmr.msra.gmra.mxu0 %v337_v8  ;;  %190 = vmatmul.bf16.vlgmr.msra.gmra.mxu1 %v339_v9 }
  0x2d   :  { %200 = vmatmul.bf16.vlgmr.msra.gmra.mxu2 %v341_v10  ;;  %210 = vmatmul.bf16.vlgmr.msra.gmra.mxu3 %v343_v11 }
  0x3c   :  { %185 = vmatmul.bf16.gmra.mxu0 %v338_v12  ;;  %195 = vmatmul.bf16.gmra.mxu1 %v340_v13 }
  0x3d   :  { %205 = vmatmul.bf16.gmra.mxu2 %v342_v14  ;;  %215 = vmatmul.bf16.gmra.mxu3 %v344_v15 }
  0xa9   :  { %v181_v16 = vpop.f32.mrf.mxu0  ;;  %v191_v17 = vpop.f32.mrf.mxu1 }
  0xb0   :  { %v201_v18 = vpop.f32.mrf.mxu2  ;;  %v211_v19 = vpop.f32.mrf.mxu3 }
  0xb1   :  { %v183_v20 = vpop.f32.mrf.mxu0  ;;  %v193_v21 = vpop.f32.mrf.mxu1 }
  0xb2   :  { %v356_v22 = vpack.c.bf16 %v183_v20, %v181_v16  ;;  %v366_v23 = vpack.c.bf16 %v193_v21, %v191_v17 }
  0xb4   :  { %357 = vst [vmem:[#allocation7] sm:$0xff] %v356_v22  }
  0xb5   :  { %394 = vst [vmem:[#allocation7 + $0x10] sm:$0xff] %v366_v23  }
  0xb8   :  { %v203_v24 = vpop.f32.mrf.mxu2  ;;  %v213_v25 = vpop.f32.mrf.mxu3 }
  0xb9   :  { %v376_v26 = vpack.c.bf16 %v203_v24, %v201_v18  ;;  %v386_v27 = vpack.c.bf16 %v213_v25, %v211_v19  ;;  %v186_v28 = vpop.f32.mrf.mxu0  ;;  %v196_v29 = vpop.f32.mrf.mxu1 }
  0xbb   :  { %396 = vst [vmem:[#allocation7 + $0x20] sm:$0xff] %v376_v26  }
  0xbc   :  { %398 = vst [vmem:[#allocation7 + $0x30] sm:$0xff] %v386_v27  }
  0xc0   :  { %v206_v30 = vpop.f32.mrf.mxu2  ;;  %v216_v31 = vpop.f32.mrf.mxu3 }
  0xc1   :  { %v188_v32 = vpop.f32.mrf.mxu0  ;;  %v198_v33 = vpop.f32.mrf.mxu1 }
  0xc2   :  { %v361_v34 = vpack.c.bf16 %v188_v32, %v186_v28  ;;  %v371_v35 = vpack.c.bf16 %v198_v33, %v196_v29 }
  0xc4   :  { %393 = vst [vmem:[#allocation7 + $0x8] sm:$0xff] %v361_v34  }
  0xc5   :  { %395 = vst [vmem:[#allocation7 + $0x18] sm:$0xff] %v371_v35  }
  0xc8   :  { %v208_v36 = vpop.f32.mrf.mxu2  ;;  %v218_v37 = vpop.f32.mrf.mxu3 }
  0xc9   :  { %v381_v38 = vpack.c.bf16 %v208_v36, %v206_v30  ;;  %v391_v39 = vpack.c.bf16 %v218_v37, %v216_v31 }
  0xcb   :  { %397 = vst [vmem:[#allocation7 + $0x28] sm:$0xff] %v381_v38  }
  0xcc   :  { %399 = vst [vmem:[#allocation7 + $0x38] sm:$0xff] %v391_v39  }
  0xcd   :  { %265 = dma.vmem_to_hbm [thread:$0]  %s258_s1, 1024, %s260_s23, [#allocation4], %s508_s17, %s508_s17, %s509_s18  }
  0xce   :  { %505 = dma.done.wait [#allocation4], 1024  }
  0xcf   :  { %506 = vsyncadd [#allocation4], 4294966272 }
  0xd0   :  { %270 = vsyncpa [#allocation3], 1 }
  0xd1   :  { %271 = vsyncpa [#allocation6], 1 }
  0xd2   :  { %272 = vsyncpa [#allocation4], 1 }

</bundles_post_ra>
